<compile_context>
chip_gen: v7x
topology: tpu7x:2x2x1
jax: 0.10.0
libtpu: 0.0.40
codegen_flags: <defaults>
</compile_context>

<pallas_src>
import jax
import jax.numpy as jnp
from jax import lax
from jax.experimental import pallas as pl
from jax.experimental.pallas import tpu as pltpu


def _mean_pool_kernel(h_ref, m_ref, o_ref, acc_ref, cnt_ref):
    # h_ref: (TB, TS, TH)  m_ref: (TB, TS)  o_ref: (TB, TH)
    # acc_ref: (TB, TH) f32 running masked sum; cnt_ref: (TB, 1) f32 mask count.
    s_idx = pl.program_id(2)

    @pl.when(s_idx == 0)
    def _init():
        acc_ref[...] = jnp.zeros_like(acc_ref)
        cnt_ref[...] = jnp.zeros_like(cnt_ref)

    m = m_ref[...]                                           # (TB, TS), native dtype
    cnt_ref[...] += jnp.sum(m.astype(jnp.float32), axis=1, keepdims=True)

    h = h_ref[...]                                           # (TB, TS, TH)
    if h_ref.dtype == jnp.float32:
        # f32: VPU multiply + sublane reduce; HBM-bound and exact.
        acc_ref[...] += jnp.sum(h * m.astype(jnp.float32)[:, :, None], axis=1)
    else:
        # bf16/f16: masked partial sum as a batched MXU contraction over TS.
        # (TB, 1, TS) @ (TB, TS, TH) -> (TB, 1, TH), accumulated in f32.
        part = lax.dot_general(
            m.astype(h.dtype)[:, None, :], h,
            dimension_numbers=(((2,), (1,)), ((0,), (0,))),
            preferred_element_type=jnp.float32,
        )
        acc_ref[...] += part[:, 0, :]

    @pl.when(s_idx == pl.num_programs(2) - 1)
    def _finalize():
        # No clamp: zero mask count -> inf/nan, matching torch semantics.
        o_ref[...] = (acc_ref[...] / cnt_ref[...]).astype(o_ref.dtype)


def _pick_tiles(B, S, H, itemsize, budget_bytes):
    """Pick (TB, TS, TH) so the hidden-states block fits the VMEM budget."""
    # Batch tile: multiple of 8 dividing B (sublane-dense mask/out blocks);
    # prefer B//TB >= 2 so the leading "parallel" axis can shard over 2 TCs.
    tb_opts = [c for c in (32, 16, 8) if B % c == 0 and B // c >= 2]
    if not tb_opts:
        tb_opts = [c for c in (16, 8) if B % c == 0] or [B]
    # Hidden tile: lane-dense multiple of 128 dividing H (else the full H).
    th_opts = [c for c in (4096, 2048, 1024, 512, 256, 128) if H % c == 0] or [H]
    # Sequence tile: lane-dense multiple of 128 dividing S (else the full S).
    ts_opts = [c for c in (2048, 1024, 512, 256, 128) if S % c == 0] or [S]

    # Largest block under budget; shrink TS first (keeps the DMA-contiguous
    # TH wide), then TH, then TB.
    for tb in tb_opts:
        for th in th_opts:
            for ts in ts_opts:
                if tb * ts * th * itemsize <= budget_bytes:
                    return tb, ts, th
    # Pathological shapes (e.g. huge prime H): smallest expressible block.
    return tb_opts[-1], ts_opts[-1], th_opts[-1]


def mean_pooling(hidden_states, attention_mask, *, block_b=None, block_s=None,
                 block_h=None, vmem_budget_bytes=8 * 1024 * 1024,
                 vmem_limit_bytes=48 * 1024 * 1024):
    """Pallas equivalent of MeanPooling.forward.

    hidden_states: (B, S, H); attention_mask: (B, S)  ->  (B, H) in hidden dtype.
    """
    B, S, H = hidden_states.shape
    assert attention_mask.shape == (B, S), (attention_mask.shape, (B, S))

    itemsize = jnp.dtype(hidden_states.dtype).itemsize
    tb, ts, th = _pick_tiles(B, S, H, itemsize, vmem_budget_bytes)
    # Manual overrides (not re-checked against the VMEM budget).
    if block_b is not None:
        tb = block_b
    if block_s is not None:
        ts = block_s
    if block_h is not None:
        th = block_h
    assert B % tb == 0 and S % ts == 0 and H % th == 0, (B, S, H, tb, ts, th)

    return pl.pallas_call(
        _mean_pool_kernel,
        out_shape=jax.ShapeDtypeStruct((B, H), hidden_states.dtype),
        grid_spec=pltpu.PrefetchScalarGridSpec(
            num_scalar_prefetch=0,
            grid=(B // tb, H // th, S // ts),
            in_specs=[
                pl.BlockSpec((tb, ts, th), lambda b, h, s: (b, s, h)),
                pl.BlockSpec((tb, ts), lambda b, h, s: (b, s)),
            ],
            out_specs=pl.BlockSpec((tb, th), lambda b, h, s: (b, h)),
            scratch_shapes=[
                pltpu.VMEM((tb, th), jnp.float32),   # masked-sum accumulator
                pltpu.VMEM((tb, 1), jnp.float32),    # mask-count accumulator
            ],
        ),
        compiler_params=pltpu.CompilerParams(
            dimension_semantics=("parallel", "parallel", "arbitrary"),
            vmem_limit_bytes=vmem_limit_bytes,
        ),
    )(hidden_states, attention_mask)


def _reference(hidden_states, attention_mask):
    mask = attention_mask.astype(jnp.float32)[..., None]
    h = hidden_states.astype(jnp.float32)
    return jnp.sum(h * mask, axis=1) / jnp.sum(mask, axis=1)


if __name__ == "__main__":
    key = jax.random.PRNGKey(0)

    # --- Test 1: module-sized small shapes (single grid step, f32). ---
    B, S, H = 2, 8, 32
    k1, k2 = jax.random.split(key)
    h1 = jax.random.normal(k1, (B, S, H), dtype=jnp.float32)
    lengths1 = jnp.array([5, 8], dtype=jnp.int32)
    m1 = (jnp.arange(S)[None, :] < lengths1[:, None]).astype(jnp.float32)
    out1 = mean_pooling(h1, m1)
    jax.block_until_ready(out1)
    assert out1.shape == (B, H)
    assert jnp.allclose(out1, _reference(h1, m1), atol=1e-5, rtol=1e-4)

    # --- Test 2: multi-step S reduction + H tiling, int32 mask, f32 path. ---
    B, S, H = 8, 256, 256
    k3, _ = jax.random.split(k2)
    h2 = jax.random.normal(k3, (B, S, H), dtype=jnp.float32)
    lengths2 = jnp.array([256, 200, 128, 17, 1, 77, 250, 5], dtype=jnp.int32)
    m2_i32 = (jnp.arange(S)[None, :] < lengths2[:, None]).astype(jnp.int32)
    out2 = mean_pooling(h2, m2_i32, block_s=128, block_h=128)   # grid (1, 2, 2)
    jax.block_until_ready(out2)
    assert out2.shape == (B, H)
    assert jnp.allclose(out2, _reference(h2, m2_i32), atol=1e-5, rtol=1e-4)

    # --- Test 3: bfloat16 hidden states (MXU contraction, f32 accumulation). ---
    h3 = h2.astype(jnp.bfloat16)
    m2_f32 = m2_i32.astype(jnp.float32)
    out3 = mean_pooling(h3, m2_f32, block_s=128, block_h=128)
    jax.block_until_ready(out3)
    assert out3.dtype == jnp.bfloat16
    assert jnp.allclose(out3.astype(jnp.float32), _reference(h3, m2_f32),
                        atol=2e-2, rtol=2e-2)

    print("KERNEL_OK")
</pallas_src>

<mosaic_0001>
module attributes {stable_mosaic.version = 11 : i64} {
  func.func @_mean_pool_kernel(%arg0: i32, %arg1: i32, %arg2: i32, %arg3: memref<2x8x32xf32, #tpu.memory_space<vmem>>, %arg4: memref<2x8xf32, #tpu.memory_space<vmem>>, %arg5: memref<2x32xf32, #tpu.memory_space<vmem>>, %arg6: memref<2x32xf32, #tpu.memory_space<vmem>>, %arg7: memref<2x1xf32, #tpu.memory_space<vmem>>) attributes {dimension_semantics = [#tpu.dimension_semantics<parallel>, #tpu.dimension_semantics<parallel>, #tpu.dimension_semantics<arbitrary>], iteration_bounds = array<i64: 1, 1, 1>, scalar_prefetch = 0 : i64, scratch_operands = 2 : i64, tpu.core_type = #tpu.core_type<tc>, window_params = [{transform_indices = @transform_0, window_bounds = array<i64: 2, 8, 32>}, {transform_indices = @transform_1, window_bounds = array<i64: 2, 8>}, {transform_indices = @transform_2, window_bounds = array<i64: 2, 32>}]} {
    %c0_i32 = arith.constant 0 : i32
    %0 = arith.cmpi eq, %arg2, %c0_i32 : i32
    %1 = arith.extui %0 : i1 to i32
    %c0_i32_0 = arith.constant 0 : i32
    %2 = arith.cmpi ne, %1, %c0_i32_0 : i32
    scf.if %2 {
      %cst_16 = arith.constant 0.000000e+00 : f32
      %20 = vector.broadcast %cst_16 : f32 to vector<2x32xf32>
      %c0_17 = arith.constant 0 : index
      %c0_18 = arith.constant 0 : index
      %21 = vector.load %arg6[%c0_17, %c0_18] : memref<2x32xf32, #tpu.memory_space<vmem>>, vector<2x32xf32>
      tpu.vector_store %arg6[%c0_17, %c0_18], %20 {strides = array<i32>} : memref<2x32xf32, #tpu.memory_space<vmem>>, vector<2x32xf32>,
      %cst_19 = arith.constant 0.000000e+00 : f32
      %22 = vector.broadcast %cst_19 : f32 to vector<2x1xf32>
      %c0_20 = arith.constant 0 : index
      %c0_21 = arith.constant 0 : index
      %23 = vector.load %arg7[%c0_20, %c0_21] : memref<2x1xf32, #tpu.memory_space<vmem>>, vector<2x1xf32>
      tpu.vector_store %arg7[%c0_20, %c0_21], %22 {strides = array<i32>} : memref<2x1xf32, #tpu.memory_space<vmem>>, vector<2x1xf32>,
    } else {
    }
    %c0 = arith.constant 0 : index
    %c0_1 = arith.constant 0 : index
    %3 = vector.load %arg4[%c0, %c0_1] : memref<2x8xf32, #tpu.memory_space<vmem>>, vector<2x8xf32>
    %c0_2 = arith.constant 0 : index
    %c0_3 = arith.constant 0 : index
    %4 = vector.load %arg7[%c0_2, %c0_3] : memref<2x1xf32, #tpu.memory_space<vmem>>, vector<2x1xf32>
    %cst = arith.constant dense<0.000000e+00> : vector<2xf32>
    %5 = vector.multi_reduction <add>, %3, %cst [1] : vector<2x8xf32> to vector<2xf32>
    %6 = vector.shape_cast %5 : vector<2xf32> to vector<2x1xf32>
    %7 = arith.addf %4, %6 : vector<2x1xf32>
    %c0_4 = arith.constant 0 : index
    %c0_5 = arith.constant 0 : index
    %8 = vector.load %arg7[%c0_4, %c0_5] : memref<2x1xf32, #tpu.memory_space<vmem>>, vector<2x1xf32>
    tpu.vector_store %arg7[%c0_4, %c0_5], %7 {strides = array<i32>} : memref<2x1xf32, #tpu.memory_space<vmem>>, vector<2x1xf32>,
    %c0_6 = arith.constant 0 : index
    %c0_7 = arith.constant 0 : index
    %c0_8 = arith.constant 0 : index
    %9 = vector.load %arg3[%c0_6, %c0_7, %c0_8] : memref<2x8x32xf32, #tpu.memory_space<vmem>>, vector<2x8x32xf32>
    %c0_9 = arith.constant 0 : index
    %c0_10 = arith.constant 0 : index
    %10 = vector.load %arg6[%c0_9, %c0_10] : memref<2x32xf32, #tpu.memory_space<vmem>>, vector<2x32xf32>
    %11 = vector.shape_cast %3 : vector<2x8xf32> to vector<2x8x1xf32>
    %12 = vector.broadcast %11 : vector<2x8x1xf32> to vector<2x8x32xf32>
    %13 = arith.mulf %9, %12 : vector<2x8x32xf32>
    %cst_11 = arith.constant dense<0.000000e+00> : vector<2x32xf32>
    %14 = vector.multi_reduction <add>, %13, %cst_11 [1] : vector<2x8x32xf32> to vector<2x32xf32>
    %15 = arith.addf %10, %14 : vector<2x32xf32>
    %c0_12 = arith.constant 0 : index
    %c0_13 = arith.constant 0 : index
    %16 = vector.load %arg6[%c0_12, %c0_13] : memref<2x32xf32, #tpu.memory_space<vmem>>, vector<2x32xf32>
    tpu.vector_store %arg6[%c0_12, %c0_13], %15 {strides = array<i32>} : memref<2x32xf32, #tpu.memory_space<vmem>>, vector<2x32xf32>,
    %c0_i32_14 = arith.constant 0 : i32
    %17 = arith.cmpi eq, %arg2, %c0_i32_14 : i32
    %18 = arith.extui %17 : i1 to i32
    %c0_i32_15 = arith.constant 0 : i32
    %19 = arith.cmpi ne, %18, %c0_i32_15 : i32
    scf.if %19 {
      %c0_16 = arith.constant 0 : index
      %c0_17 = arith.constant 0 : index
      %20 = vector.load %arg6[%c0_16, %c0_17] : memref<2x32xf32, #tpu.memory_space<vmem>>, vector<2x32xf32>
      %c0_18 = arith.constant 0 : index
      %c0_19 = arith.constant 0 : index
      %21 = vector.load %arg7[%c0_18, %c0_19] : memref<2x1xf32, #tpu.memory_space<vmem>>, vector<2x1xf32>
      %22 = vector.broadcast %21 : vector<2x1xf32> to vector<2x32xf32>
      %23 = arith.divf %20, %22 : vector<2x32xf32>
      %c0_20 = arith.constant 0 : index
      %c0_21 = arith.constant 0 : index
      %24 = vector.load %arg5[%c0_20, %c0_21] : memref<2x32xf32, #tpu.memory_space<vmem>>, vector<2x32xf32>
      tpu.vector_store %arg5[%c0_20, %c0_21], %23 {strides = array<i32>} : memref<2x32xf32, #tpu.memory_space<vmem>>, vector<2x32xf32>,
    } else {
    }
    return
  }
  func.func @transform_0(%arg0: i32, %arg1: i32, %arg2: i32) -> (i32, i32, i32) {
    %c0_i32 = arith.constant 0 : i32
    return %arg0, %arg2, %arg1 : i32, i32, i32
  }
  func.func @transform_1(%arg0: i32, %arg1: i32, %arg2: i32) -> (i32, i32) {
    %c0_i32 = arith.constant 0 : i32
    return %arg0, %arg2 : i32, i32
  }
  func.func @transform_2(%arg0: i32, %arg1: i32, %arg2: i32) -> (i32, i32) {
    %c0_i32 = arith.constant 0 : i32
    return %arg0, %arg1 : i32, i32
  }
}

</mosaic_0001>

<bundles_post_ra>
// kernel: tpu_custom_call.1
= control target key start
LH: loop header
LB: loop body
LE: loop exit
PB: predicated region body
PF: predicated region fallthrough
CT: control target
= control target key end

     0   :  { %7 = vsyncpa [#allocation5], 0  ;;  %s224_s0 = inlined_call_operand.hbm [shape: f32[2,8,32], index: 0, kind: input, shape index: {}]   ;;  %s225_s1 = inlined_call_operand.vmem [shape: f32[2,8], index: 1, kind: input, shape index: {}]   ;;  %s226_s2 = inlined_call_operand.hbm [shape: f32[2,32], index: 2, kind: output, shape index: {}]  }
   0x1   :  { %8 = vsyncpa [#allocation6], 0  ;;  %s171_s9 = smov [#allocation4]   ;;  %s123_s13 = scalar_lea.hbm %s224_s0, 256 }
   0x2   :  { %s14_s10 = sshll.u32 %s171_s9, 4  ;;  %p124_p0 = scmp.ne.s32.totalorder %s224_s0, %s123_s13  ;;  %s15_s10 = int_to_ptr.vmem [resolvable:$true] %s14_s10 }
   0x3   :  { %p127_p1 = scmp.lt.u32.totalorder %s123_s13, %s224_s0 }
   0x5   :  { %p129_p2 = pnand %p127_p1, %p124_p0 }
   0x7   :  { %132 = shalt.err (!%p129_p2)
}
   0x8   :  { %s133_s18 = scalar_lea.vmem %s15_s10, 256  ;;  %p138_p4 = scmp.lt.s32.totalorder %s15_s10, %s15_s10 }
   0x9   :  { %p134_p3 = scmp.ne.s32.totalorder %s15_s10, %s133_s18  ;;  %p139_p5 = scmp.lt.s32.totalorder %s133_s18, %s133_s18 }
   0xb   :  { %p140_p6 = por %p139_p5, %p138_p4 }
   0xd   :  { %p141_p7 = pnand %p140_p6, %p134_p3 }
   0xf   :  { %144 = shalt.err (!%p141_p7)
}
  0x10   :  { %s172_s19 = smov 128   ;;  %s173_s20 = smov 8  }
  0x11   :  { %20 = dma.hbm_to_vmem [thread:$0]  %s224_s0, 256, %s15_s10, [#allocation5], %s172_s19, %s172_s19, %s173_s20  }
  0x12   :  { %167 = dma.done.wait [#allocation5], 256  }
  0x13   :  { %168 = vsyncadd [#allocation5], 4294967040  ;;  %vm32_vm0 = vcmask 1024   ;;  %v174_v0 = vmov 0.0   ;;  %vm36_vm1 = vcmask 58368   ;;  %v46_v3 = vlaneseq  ;;  %v44_v10 = vld [vmem:[#allocation4 + $0x8] sm:$0xff] }
  0x14   :  { %33 = vst.msk [vmem:[#allocation3] sm:$0x3] %vm32_vm0, %v174_v0  ;;  %v34_v1 = vld [vmem:[%s225_s1] sm:$0x3]  ;;  %v175_v8 = vmov 0   ;;  %vm62_vm2 = vcmask 261120  }
  0x15   :  { %v37_v2 = vsel %vm36_vm1, %v34_v1, 0.0  ;;  %v47_v4 = vshrl.u32 %v46_v3, 7  ;;  %119 = vset.pattern.permute.xlu1 %v175_v8  ;;  %120 = vset.pattern.permute.xlu0 %v175_v8  ;;  %vm30_vm3 = vcmask 254976   ;;  %v43_v19 = vld [vmem:[#allocation4] sm:$0xff]  ;;  %vm79_vm4 = vcmask 1041409   ;;  %s176_s0 = smov [#allocation7]  }
  0x16   :  { %38 = vadd.xlane.f32.xlu0 %v37_v2  ;;  %31 = vst.msk [vmem:[#allocation2] sm:$0x3] %vm30_vm3, %v174_v0  ;;  %s104_s1 = sshll.u32 %s176_s0, 4  ;;  %s105_s1 = int_to_ptr.vmem [resolvable:$true] %s104_s1 }
  0x17   :  { %v55_v5 = vsub.s32 1, %v47_v4  ;;  %v48_v7 = vsub.s32 0, %v47_v4  ;;  %s145_s25 = scalar_lea.vmem %s105_s1, 32  ;;  %p150_p9 = scmp.lt.s32.totalorder %s105_s1, %s105_s1 }
  0x18   :  { %p146_p8 = scmp.ne.s32.totalorder %s105_s1, %s145_s25  ;;  %p151_p10 = scmp.lt.s32.totalorder %s145_s25, %s145_s25 }
  0x19   :  { %v56_v6 = vrot.slane %v34_v1, %v55_v5  ;;  %v49_v9 = vrot.slane %v34_v1, %v48_v7 }
  0x1a   :  { %p152_p11 = por %p151_p10, %p150_p9 }
  0x1b   :  { %58 = vbcast.lane.b32.xlu1 %v56_v6, 256  ;;  %v35_v15 = vld [vmem:[#allocation3] sm:$0x3] }
  0x1c   :  { %p153_p12 = pnand %p152_p11, %p146_p8 }
  0x1d   :  { %v45_v34 = vld [vmem:[#allocation2] sm:$0x3] }
  0x2c   :  { %51 = vbcast.lane.b32.xlu0 %v49_v9, 256 }
  0x8d   :  { %v59_v11 = vpop.permute.xlu1 %58 }
  0x8e   :  { %v61_v12 = vmul.f32 %v59_v11, %v44_v10 }
  0x90   :  { %v70_v13 = vsel %vm62_vm2, %v61_v12, 0.0 }
  0x91   :  { %v71_v14 = vrot.slane %v70_v13, 4 }
  0x93   :  { %v72_v17 = vadd.f32 %v71_v14, %v70_v13 }
  0x95   :  { %v73_v20 = vrot.slane %v72_v17, 2 }
  0x97   :  { %v74_v24 = vadd.f32 %v73_v20, %v72_v17 }
  0x99   :  { %v75_v28 = vrot.slane %v74_v24, 1 }
  0x9b   :  { %v76_v31 = vadd.f32 %v75_v28, %v74_v24 }
  0xa3   :  { %v39_v16 = vpop.xlane.xlu0 %38 }
  0xa4   :  { %v40_v18 = vadd.f32 %v39_v16, %v35_v15 }
  0xa6   :  { %42 = vst.msk [vmem:[#allocation3] sm:$0x3] %vm32_vm0, %v40_v18 }
  0xa7   :  { %v52_v21 = vpop.permute.xlu0 %51 }
  0xa8   :  { %v60_v22 = vmul.f32 %v52_v21, %v43_v19 }
  0xaa   :  { %v63_v23 = vsel %vm62_vm2, %v60_v22, 0.0 }
  0xab   :  { %v64_v25 = vrot.slane %v63_v23, 4 }
  0xad   :  { %v89_v26 = vld [vmem:[#allocation3] sm:$0x3]  ;;  %v65_v27 = vadd.f32 %v64_v25, %v63_v23 }
  0xae   :  { %92 = vperm.xlu1 %119, %v89_v26  }
  0xaf   :  { %v66_v29 = vrot.slane %v65_v27, 2 }
  0xb1   :  { %v67_v30 = vadd.f32 %v66_v29, %v65_v27 }
  0xb3   :  { %v68_v32 = vrot.slane %v67_v30, 1 }
  0xb5   :  { %v69_v33 = vadd.f32 %v68_v32, %v67_v30 }
  0xb7   :  { %v80_v35 = vsel %vm79_vm4, %v76_v31, %v69_v33 }
  0xb8   :  { %v82_v36 = vadd.f32 %v80_v35, %v45_v34 }
  0xba   :  { %84 = vst.msk [vmem:[#allocation2] sm:$0x3] %vm30_vm3, %v82_v36 }
  0xc1   :  { %v88_v39 = vld [vmem:[#allocation2] sm:$0x3] }
 0x12d   :  { %v93_v37 = vpop.permute.xlu1 %92 }
 0x12e   :  { %121 = vrcp.f32 %v93_v37 }
 0x138   :  { %v122_v38 = vpop.eup %121 }
 0x139   :  { %v96_v40 = vmul.f32 %v122_v38, %v88_v39 }
 0x13b   :  { %97 = vst.msk [vmem:[#allocation7] sm:$0x3] %vm30_vm3, %v96_v40 }
 0x13c   :  { %156 = shalt.err (!%p153_p12)
}
 0x13d   :  { %s157_s28 = scalar_lea.hbm %s226_s2, 32 }
 0x13e   :  { %p158_p13 = scmp.ne.s32.totalorder %s226_s2, %s157_s28  ;;  %p161_p0 = scmp.lt.u32.totalorder %s157_s28, %s226_s2 }
 0x140   :  { %p163_p1 = pnand %p161_p0, %p158_p13 }
 0x142   :  { %166 = shalt.err (!%p163_p1)
}
 0x143   :  { %107 = dma.vmem_to_hbm [thread:$0]  %s105_s1, 32, %s226_s2, [#allocation6]  }
 0x144   :  { %169 = dma.done.wait [#allocation6], 32  }
 0x145   :  { %170 = vsyncadd [#allocation6], 4294967264 }
 0x146   :  { %111 = vsyncpa [#allocation5], 1 }
 0x147   :  { %112 = vsyncpa [#allocation6], 1 }

</bundles_post_ra>
